<compile_context>
chip_gen: v5e
topology: v5e:2x2
jax: 0.10.0
libtpu: 0.0.40
codegen_flags: <defaults>
</compile_context>

<pallas_src>
import functools

import jax
import jax.numpy as jnp
from jax.experimental import pallas as pl
from jax.experimental.pallas import tpu as pltpu

BN_EPS = 1e-5
_LANES = 128          # lane width of activations / packed params
_ROW_ALIGN = 8        # f32 sublane tile height
_BF16_ROW_ALIGN = 16  # bf16 sublane tile height (weight-slab row alignment)

# Rows of the compact (8, 128) f32 vector-parameter block.
_GAMMA_ROW, _BETA_ROW, _B2_ROW, _B3_ROW = 0, 1, 2, 3


def _round_up(x, m):
    return (x + m - 1) // m * m


def _aug_rows(state_size):
    """fc1 rows (+1 bias row) rounded up to whole bf16 sublane tiles."""
    return _round_up(state_size + 1, _BF16_ROW_ALIGN)


def pack_weight_slab(params):
    """Pack (w1 | b1-row), w2, w3 into one zero-padded bf16 (rows, 128) slab.

    Zero padding of unused rows/lanes keeps the padded hidden lanes exactly 0
    through ReLU / BN / fc2 / fc3 (required invariant if this packing changes).
    """
    w1 = jnp.asarray(params["w1"], jnp.float32)
    state_size, fc1_units = w1.shape
    fc2_units = params["w2"].shape[1]
    action_size = params["w3"].shape[1]
    assert fc1_units <= _LANES and fc2_units <= _LANES and action_size <= _LANES

    s_aug = _aug_rows(state_size)
    rows = s_aug + 2 * _LANES
    slab = jnp.zeros((rows, _LANES), jnp.float32)

    # fc1 weights; bias folded in as row `state_size` (state gets a ones col).
    slab = slab.at[:state_size, :fc1_units].set(w1)
    slab = slab.at[state_size, :fc1_units].set(
        jnp.asarray(params["b1"], jnp.float32).reshape(-1))
    # fc2 / fc3 weights in the top-left corner of their 128x128 blocks.
    slab = slab.at[s_aug:s_aug + fc1_units, :fc2_units].set(
        jnp.asarray(params["w2"], jnp.float32))
    slab = slab.at[s_aug + _LANES:s_aug + _LANES + fc2_units, :action_size].set(
        jnp.asarray(params["w3"], jnp.float32))
    return slab.astype(jnp.bfloat16)


def pack_vector_slab(params):
    """gamma / beta / b2 / b3 compacted into rows 0..3 of one (8,128) f32 tile."""
    fc1_units = params["w1"].shape[1]
    fc2_units = params["w2"].shape[1]
    action_size = params["w3"].shape[1]
    v = jnp.zeros((_ROW_ALIGN, _LANES), jnp.float32)
    v = v.at[_GAMMA_ROW, :fc1_units].set(
        jnp.asarray(params["gamma"], jnp.float32).reshape(-1))
    v = v.at[_BETA_ROW, :fc1_units].set(
        jnp.asarray(params["beta"], jnp.float32).reshape(-1))
    v = v.at[_B2_ROW, :fc2_units].set(
        jnp.asarray(params["b2"], jnp.float32).reshape(-1))
    v = v.at[_B3_ROW, :action_size].set(
        jnp.asarray(params["b3"], jnp.float32).reshape(-1))
    return v


@functools.lru_cache(maxsize=None)
def _build_forward(batch, state_size, w_rows):
    s_aug = _aug_rows(state_size)
    assert w_rows == s_aug + 2 * _LANES, (w_rows, s_aug)
    inv_n = 1.0 / float(batch)

    def kernel(x_ref, w_ref, v_ref, o_ref):
        # (B, s_aug) state with a trailing ones column (fc1 bias lane).
        x = x_ref[...].astype(jnp.bfloat16)

        # Static, tile-aligned views into the bf16 weight slab (free).
        w1 = w_ref[:s_aug, :]                       # (s_aug, 128), bias folded
        w2 = w_ref[s_aug:s_aug + _LANES, :]         # (128, 128)
        w3 = w_ref[s_aug + _LANES:, :]              # (128, 128)

        # One full (8,128) f32 tile load for all remaining vector params.
        vec = v_ref[...]
        gamma = vec[_GAMMA_ROW:_GAMMA_ROW + 1, :]
        beta = vec[_BETA_ROW:_BETA_ROW + 1, :]
        b2 = vec[_B2_ROW:_B2_ROW + 1, :]
        b3 = vec[_B3_ROW:_B3_ROW + 1, :]

        # fc1 (+ bias via ones column) + ReLU.  bf16 MXU operands, f32 accum.
        h1 = jnp.maximum(
            jnp.dot(x, w1, preferred_element_type=jnp.float32), 0.0)  # (B,128)

        # BatchNorm1d, training-mode batch stats, biased variance.
        # Single pass: var = E[h^2] - mean^2 (two back-to-back sublane
        # reductions); mean folded into the affine so the per-element path is
        # a single multiply-add.  Padded lanes stay exactly 0 (gamma/beta 0).
        s1 = jnp.sum(h1, axis=0, keepdims=True)
        s2 = jnp.sum(h1 * h1, axis=0, keepdims=True)
        mean = s1 * inv_n
        var = jnp.maximum(s2 * inv_n - mean * mean, 0.0)
        scale = jax.lax.rsqrt(var + BN_EPS) * gamma      # (1, 128)
        shift = beta - mean * scale                      # (1, 128)
        xbn = h1 * scale + shift                         # (B, 128), f32

        # fc2 + ReLU.
        h2 = jnp.maximum(
            jnp.dot(xbn.astype(jnp.bfloat16), w2,
                    preferred_element_type=jnp.float32) + b2, 0.0)

        # fc3 -> full (B, 128) lane-dense block (unmasked store).
        o_ref[...] = jnp.dot(h2.astype(jnp.bfloat16), w3,
                             preferred_element_type=jnp.float32) + b3

    # Grid-free: the whole problem is one VMEM-resident invocation.  Guard
    # VMEM explicitly (v7x physical VMEM is 64 MiB; v5e's default scoped
    # limit is only 16 MiB) and keep generous headroom.
    need = (batch * s_aug * 4              # state (f32)
            + w_rows * _LANES * 2          # bf16 weight slab
            + _ROW_ALIGN * _LANES * 4      # f32 vector block
            + 5 * batch * _LANES * 4)      # h1 / h1^2 / xbn / h2 / out (f32)
    assert need * 4 <= (64 << 20), (
        "batch too large for the grid-free path; tile the batch axis with a "
        "two-phase BN (accumulate stats per tile, then revisit) instead.")
    vmem_limit = int(min(64 << 20, max(16 << 20, 4 * need)))

    return pl.pallas_call(
        kernel,
        in_specs=[
            pl.BlockSpec(memory_space=pltpu.MemorySpace.VMEM),
            pl.BlockSpec(memory_space=pltpu.MemorySpace.VMEM),
            pl.BlockSpec(memory_space=pltpu.MemorySpace.VMEM),
        ],
        out_specs=pl.BlockSpec(memory_space=pltpu.MemorySpace.VMEM),
        out_shape=jax.ShapeDtypeStruct((batch, _LANES), jnp.float32),
        compiler_params=pltpu.CompilerParams(vmem_limit_bytes=vmem_limit),
    )


def _augment_state(state, s_aug):
    """Zero-pad features to s_aug and set column `state_size` to 1 (fc1 bias)."""
    batch, state_size = state.shape
    x = jnp.zeros((batch, s_aug), jnp.float32)
    x = x.at[:, :state_size].set(state.astype(jnp.float32))
    return x.at[:, state_size].set(1.0)


def qnetwork_bn_forward(state, weight_slab, vector_slab, action_size):
    """Full QNetworkBN forward in one grid-free Pallas kernel invocation."""
    batch, state_size = state.shape
    s_aug = _aug_rows(state_size)
    fwd = _build_forward(batch, state_size, weight_slab.shape[0])
    x = _augment_state(state, s_aug)
    out_padded = fwd(x, weight_slab, vector_slab)     # (B, 128)
    return out_padded[:, :action_size]


def init_params(key, state_size, action_size, fc1_units=64, fc2_units=64):
    """PyTorch-style init: Linear U(-1/sqrt(in), 1/sqrt(in)); BN gamma=1, beta=0."""
    ks = jax.random.split(key, 6)

    def linear(kw, kb, fan_in, fan_out):
        bound = 1.0 / jnp.sqrt(jnp.float32(fan_in))
        w = jax.random.uniform(kw, (fan_in, fan_out), jnp.float32, -bound, bound)
        b = jax.random.uniform(kb, (1, fan_out), jnp.float32, -bound, bound)
        return w, b

    w1, b1 = linear(ks[0], ks[1], state_size, fc1_units)
    w2, b2 = linear(ks[2], ks[3], fc1_units, fc2_units)
    w3, b3 = linear(ks[4], ks[5], fc2_units, action_size)
    return {
        "w1": w1, "b1": b1,
        "gamma": jnp.ones((1, fc1_units), jnp.float32),
        "beta": jnp.zeros((1, fc1_units), jnp.float32),
        "w2": w2, "b2": b2,
        "w3": w3, "b3": b3,
    }


def reference_forward(state, params):
    """Pure-JAX f32 reference (two-pass variance, as in nn.BatchNorm1d)."""
    h1 = jnp.maximum(state @ params["w1"] + params["b1"], 0.0)
    mean = jnp.mean(h1, axis=0, keepdims=True)
    var = jnp.mean((h1 - mean) ** 2, axis=0, keepdims=True)
    xbn = (h1 - mean) / jnp.sqrt(var + BN_EPS) * params["gamma"] + params["beta"]
    h2 = jnp.maximum(xbn @ params["w2"] + params["b2"], 0.0)
    return h2 @ params["w3"] + params["b3"]


def reference_forward_bf16(state, params):
    """Pure-JAX reference with the same bf16 weight/operand rounding as the
    kernel (BN statistics and elementwise math in f32)."""
    bf, f32 = jnp.bfloat16, jnp.float32
    x = state.astype(f32).astype(bf)
    h1 = jnp.dot(x, params["w1"].astype(bf), preferred_element_type=f32)
    h1 = jnp.maximum(h1 + params["b1"].astype(bf).astype(f32), 0.0)
    mean = jnp.mean(h1, axis=0, keepdims=True)
    var = jnp.maximum(jnp.mean(h1 * h1, axis=0, keepdims=True) - mean * mean, 0.0)
    scale = jax.lax.rsqrt(var + BN_EPS) * params["gamma"]
    shift = params["beta"] - mean * scale
    xbn = h1 * scale + shift
    h2 = jnp.dot(xbn.astype(bf), params["w2"].astype(bf), preferred_element_type=f32)
    h2 = jnp.maximum(h2 + params["b2"], 0.0)
    return (jnp.dot(h2.astype(bf), params["w3"].astype(bf),
                    preferred_element_type=f32) + params["b3"])


if __name__ == "__main__":
    # Small shapes consistent with the module: batch=8, state_size=8,
    # fc1_units=fc2_units=64 (BatchNorm1d(64)), action_size=4.
    batch, state_size, action_size = 8, 8, 4

    key = jax.random.PRNGKey(0)
    k_param, k_state = jax.random.split(key)
    params = init_params(k_param, state_size, action_size)
    state = jax.random.normal(k_state, (batch, state_size), jnp.float32)

    # One-time host packing: one bf16 weight slab + one compact f32 vector tile.
    w_slab = jax.block_until_ready(pack_weight_slab(params))
    v_slab = jax.block_until_ready(pack_vector_slab(params))

    fwd = jax.jit(functools.partial(qnetwork_bn_forward, action_size=action_size))
    out = jax.block_until_ready(fwd(state, w_slab, v_slab))

    ref_bf16 = jax.block_until_ready(reference_forward_bf16(state, params))
    ref_f32 = jax.block_until_ready(reference_forward(state, params))

    assert out.shape == (batch, action_size), out.shape
    # Tight check vs. a reference with identical bf16 weight rounding.
    assert jnp.allclose(out, ref_bf16, atol=1e-2, rtol=1e-2), (
        "mismatch vs bf16-matched reference:\n%r\n%r" % (out, ref_bf16))
    # Loose sanity check vs. the pure-f32 PyTorch-equivalent reference
    # (bf16 weights trade ~1e-2 relative precision for half the slab DMA).
    assert jnp.allclose(out, ref_f32, atol=1e-1, rtol=1e-1), (
        "mismatch vs f32 reference:\n%r\n%r" % (out, ref_f32))

    print("KERNEL_OK")
</pallas_src>

<mosaic_0001>
module attributes {stable_mosaic.version = 11 : i64} {
  func.func @kernel(%arg0: memref<8x16xf32, #tpu.memory_space<vmem>>, %arg1: memref<272x128xbf16, #tpu.memory_space<vmem>>, %arg2: memref<8x128xf32, #tpu.memory_space<vmem>>, %arg3: memref<8x128xf32, #tpu.memory_space<vmem>>) attributes {dimension_semantics = [], scalar_prefetch = 0 : i64, scratch_operands = 0 : i64, tpu.core_type = #tpu.core_type<tc>} {
    %c0 = arith.constant 0 : index
    %c0_0 = arith.constant 0 : index
    %0 = vector.load %arg0[%c0, %c0_0] : memref<8x16xf32, #tpu.memory_space<vmem>>, vector<8x16xf32>
    %1 = arith.truncf %0 : vector<8x16xf32> to vector<8x16xbf16>
    %c0_1 = arith.constant 0 : index
    %c0_2 = arith.constant 0 : index
    %2 = vector.load %arg1[%c0_1, %c0_2] : memref<272x128xbf16, #tpu.memory_space<vmem>>, vector<16x128xbf16>
    %c16 = arith.constant 16 : index
    %c0_3 = arith.constant 0 : index
    %3 = vector.load %arg1[%c16, %c0_3] : memref<272x128xbf16, #tpu.memory_space<vmem>>, vector<128x128xbf16>
    %c144 = arith.constant 144 : index
    %c0_4 = arith.constant 0 : index
    %4 = vector.load %arg1[%c144, %c0_4] : memref<272x128xbf16, #tpu.memory_space<vmem>>, vector<128x128xbf16>
    %c0_5 = arith.constant 0 : index
    %c0_6 = arith.constant 0 : index
    %5 = vector.load %arg2[%c0_5, %c0_6] : memref<8x128xf32, #tpu.memory_space<vmem>>, vector<8x128xf32>
    %6 = vector.extract_strided_slice %5 {offsets = [0, 0], sizes = [1, 128], strides = [1, 1]} : vector<8x128xf32> to vector<1x128xf32>
    %7 = vector.extract_strided_slice %5 {offsets = [1, 0], sizes = [1, 128], strides = [1, 1]} : vector<8x128xf32> to vector<1x128xf32>
    %8 = vector.extract_strided_slice %5 {offsets = [2, 0], sizes = [1, 128], strides = [1, 1]} : vector<8x128xf32> to vector<1x128xf32>
    %9 = vector.extract_strided_slice %5 {offsets = [3, 0], sizes = [1, 128], strides = [1, 1]} : vector<8x128xf32> to vector<1x128xf32>
    %cst = arith.constant dense<0.000000e+00> : vector<8x128xf32>
    %10 = tpu.matmul %1, %2, %cst {dimension_numbers = #tpu.dot_dimension_numbers<[1], [0], [0], [1], [0, 0, 1, 1], [], []>} : vector<8x16xbf16>, vector<16x128xbf16>, vector<8x128xf32> -> vector<8x128xf32>
    %cst_7 = arith.constant 0.000000e+00 : f32
    %11 = vector.broadcast %cst_7 : f32 to vector<8x128xf32>
    %12 = arith.maximumf %10, %11 : vector<8x128xf32>
    %cst_8 = arith.constant dense<0.000000e+00> : vector<128xf32>
    %13 = vector.multi_reduction <add>, %12, %cst_8 [0] : vector<8x128xf32> to vector<128xf32>
    %14 = vector.shape_cast %13 : vector<128xf32> to vector<1x128xf32>
    %15 = arith.mulf %12, %12 : vector<8x128xf32>
    %cst_9 = arith.constant dense<0.000000e+00> : vector<128xf32>
    %16 = vector.multi_reduction <add>, %15, %cst_9 [0] : vector<8x128xf32> to vector<128xf32>
    %17 = vector.shape_cast %16 : vector<128xf32> to vector<1x128xf32>
    %cst_10 = arith.constant 1.250000e-01 : f32
    %18 = vector.broadcast %cst_10 : f32 to vector<1x128xf32>
    %19 = arith.mulf %14, %18 : vector<1x128xf32>
    %cst_11 = arith.constant 1.250000e-01 : f32
    %20 = vector.broadcast %cst_11 : f32 to vector<1x128xf32>
    %21 = arith.mulf %17, %20 : vector<1x128xf32>
    %22 = arith.mulf %19, %19 : vector<1x128xf32>
    %23 = arith.subf %21, %22 : vector<1x128xf32>
    %cst_12 = arith.constant 0.000000e+00 : f32
    %24 = vector.broadcast %cst_12 : f32 to vector<1x128xf32>
    %25 = arith.maximumf %23, %24 : vector<1x128xf32>
    %cst_13 = arith.constant 9.99999974E-6 : f32
    %26 = vector.broadcast %cst_13 : f32 to vector<1x128xf32>
    %27 = arith.addf %25, %26 : vector<1x128xf32>
    %28 = math.rsqrt %27 : vector<1x128xf32>
    %29 = arith.mulf %28, %6 : vector<1x128xf32>
    %30 = arith.mulf %19, %29 : vector<1x128xf32>
    %31 = arith.subf %7, %30 : vector<1x128xf32>
    %32 = vector.broadcast %29 : vector<1x128xf32> to vector<8x128xf32>
    %33 = arith.mulf %12, %32 : vector<8x128xf32>
    %34 = vector.broadcast %31 : vector<1x128xf32> to vector<8x128xf32>
    %35 = arith.addf %33, %34 : vector<8x128xf32>
    %36 = arith.truncf %35 : vector<8x128xf32> to vector<8x128xbf16>
    %cst_14 = arith.constant dense<0.000000e+00> : vector<8x128xf32>
    %37 = tpu.matmul %36, %3, %cst_14 {dimension_numbers = #tpu.dot_dimension_numbers<[1], [0], [0], [1], [0, 0, 1, 1], [], []>} : vector<8x128xbf16>, vector<128x128xbf16>, vector<8x128xf32> -> vector<8x128xf32>
    %38 = vector.broadcast %8 : vector<1x128xf32> to vector<8x128xf32>
    %39 = arith.addf %37, %38 : vector<8x128xf32>
    %cst_15 = arith.constant 0.000000e+00 : f32
    %40 = vector.broadcast %cst_15 : f32 to vector<8x128xf32>
    %41 = arith.maximumf %39, %40 : vector<8x128xf32>
    %42 = arith.truncf %41 : vector<8x128xf32> to vector<8x128xbf16>
    %cst_16 = arith.constant dense<0.000000e+00> : vector<8x128xf32>
    %43 = tpu.matmul %42, %4, %cst_16 {dimension_numbers = #tpu.dot_dimension_numbers<[1], [0], [0], [1], [0, 0, 1, 1], [], []>} : vector<8x128xbf16>, vector<128x128xbf16>, vector<8x128xf32> -> vector<8x128xf32>
    %44 = vector.broadcast %9 : vector<1x128xf32> to vector<8x128xf32>
    %45 = arith.addf %43, %44 : vector<8x128xf32>
    %c0_17 = arith.constant 0 : index
    %c0_18 = arith.constant 0 : index
    %46 = vector.load %arg3[%c0_17, %c0_18] : memref<8x128xf32, #tpu.memory_space<vmem>>, vector<8x128xf32>
    tpu.vector_store %arg3[%c0_17, %c0_18], %45 {strides = array<i32>} : memref<8x128xf32, #tpu.memory_space<vmem>>, vector<8x128xf32>,
    return
  }
}

</mosaic_0001>

<bundles_post_ra>
// kernel: qnetwork_bn_forward.1
= control target key start
LH: loop header
LB: loop body
LE: loop exit
PB: predicated region body
PF: predicated region fallthrough
CT: control target
= control target key end

     0   :  { %8 = vsyncpa [#allocation3], 0  ;;  %s381_s15 = smov [#allocation2]   ;;  %s382_s17 = smov 64   ;;  %s416_s0 = inlined_call_operand.vmem [shape: f32[8,16], index: 0, kind: input, shape index: {}]   ;;  %s417_s1 = inlined_call_operand.hbm [shape: bf16[272,128], index: 1, kind: input, shape index: {}]   ;;  %s418_s2 = inlined_call_operand.vmem [shape: f32[8,128], index: 2, kind: input, shape index: {}]   ;;  %s419_s3 = inlined_call_operand.vmem [shape: f32[8,128], index: 3, kind: output, shape index: {}]  }
   0x1   :  { %s15_s14 = sshll.u32 %s417_s1, 4  ;;  %s17_s16 = sshll.u32 %s381_s15, 4  ;;  %s16_s14 = int_to_ptr.hbm [resolvable:$true] %s15_s14  ;;  %s18_s16 = int_to_ptr.vmem [resolvable:$true] %s17_s16 }
   0x2   :  { %s383_s18 = smov 4  }
   0x3   :  { %23 = dma.hbm_to_vmem [thread:$0]  %s16_s14, 2176, %s18_s16, [#allocation3], %s382_s17, %s382_s17, %s383_s18  }
   0x4   :  { %379 = dma.done.wait [#allocation3], 2176  }
   0x5   :  { %380 = vsyncadd [#allocation3], 4294965120  ;;  %v333_v0 = vld [vmem:[#allocation2] sm:$0xff]  ;;  %vm74_vm0 = vcmask 130048   ;;  %v340_v4 = vld [vmem:[#allocation2 + $0x38] sm:$0xff] }
   0x6   :  { %v31_v1 = vld [vmem:[%s416_s0] sm:$0xff]  ;;  %85 = vmatpush.bf16.msra.mxu0 %v333_v0  ;;  %v339_v5 = vld [vmem:[#allocation2 + $0x30] sm:$0xff]  ;;  %v338_v6 = vld [vmem:[#allocation2 + $0x28] sm:$0xff] }
   0x7   :  { %v32_v2 = vpack.c.bf16 %v31_v1, %v31_v1  ;;  %v341_v3 = vld [vmem:[#allocation2 + $0x40] sm:$0xff]  ;;  %v336_v10 = vld [vmem:[#allocation2 + $0x18] sm:$0xff]  ;;  %v335_v15 = vld [vmem:[#allocation2 + $0x10] sm:$0xff] }
   0x8   :  { %181 = vmatpush.bf16.msra.mxu1 %v341_v3  ;;  %v337_v7 = vld [vmem:[#allocation2 + $0x20] sm:$0xff]  ;;  %v334_v21 = vld [vmem:[#allocation2 + $0x8] sm:$0xff]  ;;  %v348_v34 = vld [vmem:[#allocation2 + $0x78] sm:$0xff] }
   0x9   :  { %268 = vmatmul.msk.bf16.vlgmr.msra.gmra.mxu0 %vm74_vm0, %v32_v2  ;;  %v349_v33 = vld [vmem:[#allocation2 + $0x80] sm:$0xff]  ;;  %v347_v36 = vld [vmem:[#allocation2 + $0x70] sm:$0xff]  ;;  %v346_v39 = vld [vmem:[#allocation2 + $0x68] sm:$0xff] }
   0xa   :  { %245 = vmatpush.bf16.msra.mxu2 %v349_v33  ;;  %v345_v42 = vld [vmem:[#allocation2 + $0x60] sm:$0xff]  ;;  %v344_v47 = vld [vmem:[#allocation2 + $0x58] sm:$0xff]  ;;  %v343_v56 = vld [vmem:[#allocation2 + $0x50] sm:$0xff] }
   0xb   :  { %v67_v43 = vld [vmem:[%s418_s2] sm:$0xff]  ;;  %v342_v57 = vld [vmem:[#allocation2 + $0x48] sm:$0xff] }
   0xc   :  { %182 = vmatpush.bf16.msra.mxu1 %v340_v4  ;;  %v132_v58 = vperm.slane %v67_v43, 2  ;;  %v196_v0 = vperm.slane %v67_v43, 3 }
   0xe   :  { %246 = vmatpush.bf16.msra.mxu2 %v348_v34 }
  0x10   :  { %183 = vmatpush.bf16.msra.mxu1 %v339_v5 }
  0x12   :  { %247 = vmatpush.bf16.msra.mxu2 %v347_v36 }
  0x14   :  { %184 = vmatpush.bf16.msra.mxu1 %v338_v6 }
  0x16   :  { %248 = vmatpush.bf16.msra.mxu2 %v346_v39 }
  0x18   :  { %185 = vmatpush.bf16.msra.mxu1 %v337_v7 }
  0x1a   :  { %249 = vmatpush.bf16.msra.mxu2 %v345_v42 }
  0x1c   :  { %186 = vmatpush.bf16.msra.mxu1 %v336_v10 }
  0x1e   :  { %250 = vmatpush.bf16.msra.mxu2 %v344_v47 }
  0x20   :  { %187 = vmatpush.bf16.msra.mxu1 %v335_v15 }
  0x22   :  { %251 = vmatpush.bf16.msra.mxu2 %v343_v56 }
  0x24   :  { %188 = vmatpush.bf16.msra.mxu1 %v334_v21 }
  0x26   :  { %252 = vmatpush.bf16.msra.mxu2 %v342_v57 }
  0x86   :  { %v87_v8 = vpop.f32.mrf.mxu0 }
  0x87   :  { %v91_v9 = vmax.f32 %v87_v8, 0.0 }
  0x89   :  { %v92_v11 = vrot.slane %v91_v9, 4  ;;  %v98_v12 = vmul.f32 %v91_v9, %v91_v9 }
  0x8b   :  { %v93_v13 = vadd.f32 %v92_v11, %v91_v9  ;;  %v99_v14 = vrot.slane %v98_v12, 4 }
  0x8d   :  { %v94_v16 = vrot.slane %v93_v13, 2  ;;  %v100_v17 = vadd.f32 %v99_v14, %v98_v12 }
  0x8e   :  { %v89_v18 = vpop.f32.mrf.mxu0 }
  0x8f   :  { %v95_v19 = vadd.f32 %v94_v16, %v93_v13  ;;  %v101_v20 = vrot.slane %v100_v17, 2 }
  0x91   :  { %v102_v22 = vadd.f32 %v101_v20, %v100_v17  ;;  %v96_v23 = vrot.slane %v95_v19, 1 }
  0x93   :  { %v103_v24 = vrot.slane %v102_v22, 1  ;;  %v97_v25 = vadd.f32 %v96_v23, %v95_v19 }
  0x95   :  { %v104_v26 = vadd.f32 %v103_v24, %v102_v22  ;;  %v105_v27 = vmul.f32 0.125, %v97_v25 }
  0x97   :  { %v106_v28 = vmul.f32 0.125, %v104_v26  ;;  %v107_v29 = vmul.f32 %v105_v27, %v105_v27 }
  0x99   :  { %v108_v30 = vsub.f32 %v106_v28, %v107_v29 }
  0x9b   :  { %v109_v31 = vmax.f32 %v108_v30, 0.0 }
  0x9d   :  { %v110_v32 = vadd.f32 1e-05, %v109_v31 }
  0x9f   :  { %353 = vrsqrt.f32 %v110_v32  ;;  %vm117_vm2 = vweird.f32 %v110_v32 }
  0xa5   :  { %v354_v35 = vpop.eup %353 }
  0xa6   :  { %v112_v37 = vmul.f32 %v354_v35, %v110_v32  ;;  %vm118_vm1 = vweird.f32 %v354_v35 }
  0xa7   :  { %vm119_vm3 = vmor %vm117_vm2, %vm118_vm1 }
  0xa8   :  { %v113_v38 = vmul.f32 %v354_v35, %v112_v37 }
  0xaa   :  { %v114_v40 = vmul.f32 0.5, %v113_v38 }
  0xac   :  { %v115_v41 = vsub.f32 1.5, %v114_v40 }
  0xae   :  { %v116_v44 = vmul.f32 %v354_v35, %v115_v41 }
  0xb0   :  { %v120_v45 = vsel %vm119_vm3, %v354_v35, %v116_v44 }
  0xb1   :  { %v121_v46 = vmul.f32 %v120_v45, %v67_v43 }
  0xb3   :  { %v122_v48 = vmul.f32 %v121_v46, %v105_v27  ;;  %v127_v50 = vperm.slane %v121_v46, 0 }
  0xb5   :  { %v124_v49 = vrot.slane %v122_v48, 7  ;;  %v128_v52 = vmul.f32 %v127_v50, %v91_v9 }
  0xb7   :  { %v126_v51 = vsub.f32 %v67_v43, %v124_v49 }
  0xb9   :  { %v129_v53 = vperm.slane %v126_v51, 1 }
  0xbb   :  { %v130_v54 = vadd.f32 %v129_v53, %v128_v52 }
  0xbd   :  { %v131_v55 = vpack.c.bf16 %v130_v54, %v130_v54 }
  0xbf   :  { %189 = vmatmul.bf16.vlgmr.msra.gmra.mxu1 %v131_v55 }
 0x13c   :  { %v190_v59 = vpop.f32.mrf.mxu1 }
 0x13d   :  { %v191_v60 = vadd.f32 %v190_v59, %v132_v58 }
 0x13f   :  { %v194_v61 = vmax.f32 %v191_v60, 0.0 }
 0x141   :  { %v195_v62 = vpack.c.bf16 %v194_v61, %v194_v61 }
 0x143   :  { %253 = vmatmul.bf16.vlgmr.msra.gmra.mxu2 %v195_v62 }
 0x144   :  { %v192_v63 = vpop.f32.mrf.mxu1 }
 0x1c6   :  { %v254_v1 = vpop.f32.mrf.mxu2 }
 0x1c7   :  { %v255_v2 = vadd.f32 %v254_v1, %v196_v0 }
 0x1c9   :  { %258 = vst [vmem:[%s419_s3] sm:$0xff] %v255_v2 }
 0x1ce   :  { %v256_v3 = vpop.f32.mrf.mxu2 }
 0x1cf   :  { %263 = vsyncpa [#allocation3], 1 }

</bundles_post_ra>
